<compile_context>
chip_gen: v7x
topology: tpu7x:2x2x1
jax: 0.10.0
libtpu: 0.0.40
codegen_flags: <defaults>
</compile_context>

<pallas_src>
import jax
import jax.numpy as jnp
from jax.experimental import pallas as pl
from jax.experimental.pallas import tpu as pltpu


def _round_up(n, m):
    return ((n + m - 1) // m) * m


def _choose_batch_tiling(batch):
    """Pick (tile_rows, padded_batch):
       * tile_rows is a multiple of 16 (bf16 sublane packing),
       * padding is bounded by ~16*steps rows (no ~2x blow-up near tile edges),
       * batches >= 32 get >= 2 grid steps (v7x megacore: 2 TensorCores),
       * tiles capped at 512 rows (few grid steps for large batches; fp32
         intermediates stay ~1 MB/tile, far under any scoped-VMEM limit)."""
    max_tile = 512
    min_steps = 2 if batch >= 32 else 1
    steps = max(min_steps, pl.cdiv(batch, max_tile))
    tile = _round_up(pl.cdiv(batch, steps), 16)
    return tile, steps * tile


def _mlp_logsoftmax_kernel(x_ref, w1_ref, b1_ref, w2_ref, b2_ref,
                           w3_ref, b3_ref, out_ref):
    x = x_ref[...]  # bf16 (tb, attrs)

    # fc1 + ReLU  (bf16 MXU inputs, fp32 accumulation)
    h1 = jnp.dot(x, w1_ref[...], preferred_element_type=jnp.float32) + b1_ref[...]
    h1 = jnp.maximum(h1, 0.0)

    # fc2 + ReLU
    h2 = jnp.dot(h1.astype(jnp.bfloat16), w2_ref[...],
                 preferred_element_type=jnp.float32) + b2_ref[...]
    h2 = jnp.maximum(h2, 0.0)

    # fc3
    logits = jnp.dot(h2.astype(jnp.bfloat16), w3_ref[...],
                     preferred_element_type=jnp.float32) + b3_ref[...]
    # Padded class columns already carry a -1e30 bias (set in prepare_params,
    # weight columns are 0), so they underflow to 0 in exp and cannot affect
    # the max or the sum below.

    # Numerically stable log_softmax over the class axis (last axis).
    m = jnp.max(logits, axis=-1, keepdims=True)
    shifted = logits - m
    lse = jnp.log(jnp.sum(jnp.exp(shifted), axis=-1, keepdims=True))
    out_ref[...] = (shifted - lse).astype(out_ref.dtype)


def prepare_params(w1, b1, w2, b2, w3, b3):
    """Pad hidden dim and class dim to multiples of 128; cast weights to bf16
    (biases stay fp32).  Hidden padding is zeros (ReLU keeps them zero), class
    padding uses 0 weights + a -1e30 bias so padded logits vanish in the
    log-softmax without any in-kernel masking."""
    attrs = w1.shape[0]
    hidden = w1.shape[1]
    classes = w3.shape[1]
    hp = _round_up(hidden, 128)     # 500 -> 512
    cp = _round_up(classes, 128)    # 10  -> 128

    def pad2(a, rows, cols, value=0.0):
        return jnp.pad(a, ((0, rows - a.shape[0]), (0, cols - a.shape[1])),
                       constant_values=value)

    w1p = pad2(w1, attrs, hp).astype(jnp.bfloat16)
    b1p = pad2(b1.reshape(1, -1), 1, hp).astype(jnp.float32)
    w2p = pad2(w2, hp, hp).astype(jnp.bfloat16)
    b2p = pad2(b2.reshape(1, -1), 1, hp).astype(jnp.float32)
    w3p = pad2(w3, hp, cp).astype(jnp.bfloat16)
    b3p = pad2(b3.reshape(1, -1), 1, cp, value=-1e30).astype(jnp.float32)
    return (w1p, b1p, w2p, b2p, w3p, b3p)


def net_forward(x, padded_params, classes_count):
    """x: (batch, attrs).  padded_params: output of prepare_params."""
    w1, b1, w2, b2, w3, b3 = padded_params
    batch, attrs = x.shape
    hp = w1.shape[1]
    cp = w3.shape[1]

    tb, bp = _choose_batch_tiling(batch)

    # bf16 activations at the MXU inputs (fp32 accumulation inside the kernel).
    x = x.astype(jnp.bfloat16)
    if bp != batch:
        x = jnp.pad(x, ((0, bp - batch), (0, 0)))

    out = pl.pallas_call(
        _mlp_logsoftmax_kernel,
        out_shape=jax.ShapeDtypeStruct((bp, cp), jnp.float32),
        grid=(bp // tb,),
        in_specs=[
            pl.BlockSpec((tb, attrs), lambda i: (i, 0)),   # x: tiled over batch
            pl.BlockSpec((attrs, hp), lambda i: (0, 0)),   # weights/biases:
            pl.BlockSpec((1, hp), lambda i: (0, 0)),       # constant blocks ->
            pl.BlockSpec((hp, hp), lambda i: (0, 0)),      # DMA'd once, stay
            pl.BlockSpec((1, hp), lambda i: (0, 0)),       # VMEM-resident
            pl.BlockSpec((hp, cp), lambda i: (0, 0)),      # across batch tiles
            pl.BlockSpec((1, cp), lambda i: (0, 0)),
        ],
        out_specs=pl.BlockSpec((tb, cp), lambda i: (i, 0)),
        compiler_params=pltpu.CompilerParams(
            dimension_semantics=("parallel",)),
    )(x, w1, b1, w2, b2, w3, b3)

    return out[:batch, :classes_count]


def init_params(key, attrs_count, classes_count, hidden=500):
    # Deterministic init mimicking PyTorch nn.Linear default:
    # uniform(-1/sqrt(fan_in), +1/sqrt(fan_in)). Weights stored as (in, out).
    def linear(key, fan_in, fan_out):
        kw, kb = jax.random.split(key)
        bound = 1.0 / jnp.sqrt(fan_in)
        w = jax.random.uniform(kw, (fan_in, fan_out), jnp.float32, -bound, bound)
        b = jax.random.uniform(kb, (1, fan_out), jnp.float32, -bound, bound)
        return w, b

    k1, k2, k3 = jax.random.split(key, 3)
    w1, b1 = linear(k1, attrs_count, hidden)
    w2, b2 = linear(k2, hidden, hidden)
    w3, b3 = linear(k3, hidden, classes_count)
    return (w1, b1, w2, b2, w3, b3)


def _reference_forward(x, params):
    w1, b1, w2, b2, w3, b3 = params
    h1 = jnp.maximum(x @ w1 + b1, 0.0)
    h2 = jnp.maximum(h1 @ w2 + b2, 0.0)
    logits = h2 @ w3 + b3
    return jax.nn.log_softmax(logits, axis=1)


if __name__ == "__main__":
    attrs_count = 32
    classes_count = 10
    batch = 8

    key = jax.random.PRNGKey(0)
    kx, kp = jax.random.split(key)
    x = jax.random.normal(kx, (batch, attrs_count), jnp.float32)
    params_f32 = init_params(kp, attrs_count, classes_count)
    padded_params = prepare_params(*params_f32)

    out = net_forward(x, padded_params, classes_count)
    out = jax.block_until_ready(out)

    # sanity 1: shape + log_softmax rows exponentiate-and-sum to ~1
    row_sums = jnp.sum(jnp.exp(out), axis=1)
    assert out.shape == (batch, classes_count)
    assert bool(jnp.all(jnp.abs(row_sums - 1.0) < 1e-4))

    # sanity 2: close to fp32 reference (bf16 weights/activations -> loose tol)
    ref = _reference_forward(x, params_f32)
    assert bool(jnp.max(jnp.abs(out - ref)) < 0.1)

    print("KERNEL_OK")
</pallas_src>

<mosaic_0001>
module attributes {stable_mosaic.version = 11 : i64} {
  func.func @_mlp_logsoftmax_kernel(%arg0: i32, %arg1: memref<16x32xbf16, #tpu.memory_space<vmem>>, %arg2: memref<32x512xbf16, #tpu.memory_space<vmem>>, %arg3: memref<1x512xf32, #tpu.memory_space<vmem>>, %arg4: memref<512x512xbf16, #tpu.memory_space<vmem>>, %arg5: memref<1x512xf32, #tpu.memory_space<vmem>>, %arg6: memref<512x128xbf16, #tpu.memory_space<vmem>>, %arg7: memref<1x128xf32, #tpu.memory_space<vmem>>, %arg8: memref<16x128xf32, #tpu.memory_space<vmem>>) attributes {dimension_semantics = [#tpu.dimension_semantics<parallel>], iteration_bounds = array<i64: 1>, scalar_prefetch = 0 : i64, scratch_operands = 0 : i64, tpu.core_type = #tpu.core_type<tc>, window_params = [{transform_indices = @transform_0, window_bounds = array<i64: 16, 32>}, {pipeline_mode = #tpu.pipeline_mode<synchronous>, transform_indices = @transform_1, window_bounds = array<i64: 32, 512>}, {pipeline_mode = #tpu.pipeline_mode<synchronous>, transform_indices = @transform_2, window_bounds = array<i64: 1, 512>}, {pipeline_mode = #tpu.pipeline_mode<synchronous>, transform_indices = @transform_3, window_bounds = array<i64: 512, 512>}, {pipeline_mode = #tpu.pipeline_mode<synchronous>, transform_indices = @transform_4, window_bounds = array<i64: 1, 512>}, {pipeline_mode = #tpu.pipeline_mode<synchronous>, transform_indices = @transform_5, window_bounds = array<i64: 512, 128>}, {pipeline_mode = #tpu.pipeline_mode<synchronous>, transform_indices = @transform_6, window_bounds = array<i64: 1, 128>}, {transform_indices = @transform_7, window_bounds = array<i64: 16, 128>}]} {
    %c0 = arith.constant 0 : index
    %c0_0 = arith.constant 0 : index
    %0 = vector.load %arg1[%c0, %c0_0] : memref<16x32xbf16, #tpu.memory_space<vmem>>, vector<16x32xbf16>
    %c0_1 = arith.constant 0 : index
    %c0_2 = arith.constant 0 : index
    %1 = vector.load %arg2[%c0_1, %c0_2] : memref<32x512xbf16, #tpu.memory_space<vmem>>, vector<32x512xbf16>
    %cst = arith.constant dense<0.000000e+00> : vector<16x512xf32>
    %2 = tpu.matmul %0, %1, %cst {dimension_numbers = #tpu.dot_dimension_numbers<[1], [0], [0], [1], [0, 0, 1, 1], [], []>} : vector<16x32xbf16>, vector<32x512xbf16>, vector<16x512xf32> -> vector<16x512xf32>
    %c0_3 = arith.constant 0 : index
    %c0_4 = arith.constant 0 : index
    %3 = vector.load %arg3[%c0_3, %c0_4] : memref<1x512xf32, #tpu.memory_space<vmem>>, vector<1x512xf32>
    %4 = vector.broadcast %3 : vector<1x512xf32> to vector<16x512xf32>
    %5 = arith.addf %2, %4 : vector<16x512xf32>
    %cst_5 = arith.constant 0.000000e+00 : f32
    %6 = vector.broadcast %cst_5 : f32 to vector<16x512xf32>
    %7 = arith.maximumf %5, %6 : vector<16x512xf32>
    %8 = arith.truncf %7 : vector<16x512xf32> to vector<16x512xbf16>
    %c0_6 = arith.constant 0 : index
    %c0_7 = arith.constant 0 : index
    %9 = vector.load %arg4[%c0_6, %c0_7] : memref<512x512xbf16, #tpu.memory_space<vmem>>, vector<512x512xbf16>
    %cst_8 = arith.constant dense<0.000000e+00> : vector<16x512xf32>
    %10 = tpu.matmul %8, %9, %cst_8 {dimension_numbers = #tpu.dot_dimension_numbers<[1], [0], [0], [1], [0, 0, 1, 1], [], []>} : vector<16x512xbf16>, vector<512x512xbf16>, vector<16x512xf32> -> vector<16x512xf32>
    %c0_9 = arith.constant 0 : index
    %c0_10 = arith.constant 0 : index
    %11 = vector.load %arg5[%c0_9, %c0_10] : memref<1x512xf32, #tpu.memory_space<vmem>>, vector<1x512xf32>
    %12 = vector.broadcast %11 : vector<1x512xf32> to vector<16x512xf32>
    %13 = arith.addf %10, %12 : vector<16x512xf32>
    %cst_11 = arith.constant 0.000000e+00 : f32
    %14 = vector.broadcast %cst_11 : f32 to vector<16x512xf32>
    %15 = arith.maximumf %13, %14 : vector<16x512xf32>
    %16 = arith.truncf %15 : vector<16x512xf32> to vector<16x512xbf16>
    %c0_12 = arith.constant 0 : index
    %c0_13 = arith.constant 0 : index
    %17 = vector.load %arg6[%c0_12, %c0_13] : memref<512x128xbf16, #tpu.memory_space<vmem>>, vector<512x128xbf16>
    %cst_14 = arith.constant dense<0.000000e+00> : vector<16x128xf32>
    %18 = tpu.matmul %16, %17, %cst_14 {dimension_numbers = #tpu.dot_dimension_numbers<[1], [0], [0], [1], [0, 0, 1, 1], [], []>} : vector<16x512xbf16>, vector<512x128xbf16>, vector<16x128xf32> -> vector<16x128xf32>
    %c0_15 = arith.constant 0 : index
    %c0_16 = arith.constant 0 : index
    %19 = vector.load %arg7[%c0_15, %c0_16] : memref<1x128xf32, #tpu.memory_space<vmem>>, vector<1x128xf32>
    %20 = vector.broadcast %19 : vector<1x128xf32> to vector<16x128xf32>
    %21 = arith.addf %18, %20 : vector<16x128xf32>
    %cst_17 = arith.constant dense<0xFF800000> : vector<16xf32>
    %22 = vector.multi_reduction <maximumf>, %21, %cst_17 [1] : vector<16x128xf32> to vector<16xf32>
    %23 = vector.shape_cast %22 : vector<16xf32> to vector<16x1xf32>
    %24 = vector.broadcast %23 : vector<16x1xf32> to vector<16x128xf32>
    %25 = arith.subf %21, %24 : vector<16x128xf32>
    %26 = math.exp %25 : vector<16x128xf32>
    %cst_18 = arith.constant dense<0.000000e+00> : vector<16xf32>
    %27 = vector.multi_reduction <add>, %26, %cst_18 [1] : vector<16x128xf32> to vector<16xf32>
    %28 = vector.shape_cast %27 : vector<16xf32> to vector<16x1xf32>
    %29 = math.log %28 : vector<16x1xf32>
    %30 = vector.broadcast %29 : vector<16x1xf32> to vector<16x128xf32>
    %31 = arith.subf %25, %30 : vector<16x128xf32>
    %c0_19 = arith.constant 0 : index
    %c0_20 = arith.constant 0 : index
    %32 = vector.load %arg8[%c0_19, %c0_20] : memref<16x128xf32, #tpu.memory_space<vmem>>, vector<16x128xf32>
    tpu.vector_store %arg8[%c0_19, %c0_20], %31 {strides = array<i32>} : memref<16x128xf32, #tpu.memory_space<vmem>>, vector<16x128xf32>,
    return
  }
  func.func @transform_0(%arg0: i32) -> (i32, i32) {
    %c0_i32 = arith.constant 0 : i32
    %c0_i32_0 = arith.constant 0 : i32
    return %arg0, %c0_i32 : i32, i32
  }
  func.func @transform_1(%arg0: i32) -> (i32, i32) {
    %c0_i32 = arith.constant 0 : i32
    %c0_i32_0 = arith.constant 0 : i32
    %c0_i32_1 = arith.constant 0 : i32
    return %c0_i32, %c0_i32_0 : i32, i32
  }
  func.func @transform_2(%arg0: i32) -> (i32, i32) {
    %c0_i32 = arith.constant 0 : i32
    %c0_i32_0 = arith.constant 0 : i32
    %c0_i32_1 = arith.constant 0 : i32
    return %c0_i32, %c0_i32_0 : i32, i32
  }
  func.func @transform_3(%arg0: i32) -> (i32, i32) {
    %c0_i32 = arith.constant 0 : i32
    %c0_i32_0 = arith.constant 0 : i32
    %c0_i32_1 = arith.constant 0 : i32
    return %c0_i32, %c0_i32_0 : i32, i32
  }
  func.func @transform_4(%arg0: i32) -> (i32, i32) {
    %c0_i32 = arith.constant 0 : i32
    %c0_i32_0 = arith.constant 0 : i32
    %c0_i32_1 = arith.constant 0 : i32
    return %c0_i32, %c0_i32_0 : i32, i32
  }
  func.func @transform_5(%arg0: i32) -> (i32, i32) {
    %c0_i32 = arith.constant 0 : i32
    %c0_i32_0 = arith.constant 0 : i32
    %c0_i32_1 = arith.constant 0 : i32
    return %c0_i32, %c0_i32_0 : i32, i32
  }
  func.func @transform_6(%arg0: i32) -> (i32, i32) {
    %c0_i32 = arith.constant 0 : i32
    %c0_i32_0 = arith.constant 0 : i32
    %c0_i32_1 = arith.constant 0 : i32
    return %c0_i32, %c0_i32_0 : i32, i32
  }
  func.func @transform_7(%arg0: i32) -> (i32, i32) {
    %c0_i32 = arith.constant 0 : i32
    %c0_i32_0 = arith.constant 0 : i32
    return %arg0, %c0_i32 : i32, i32
  }
}

</mosaic_0001>

<bundles_post_ra>
// kernel: tpu_custom_call.1
= control target key start
LH: loop header
LB: loop body
LE: loop exit
PB: predicated region body
PF: predicated region fallthrough
CT: control target
= control target key end

     0   :  { %12 = vsyncpa [#allocation3], 0  ;;  %s2397_s0 = inlined_call_operand.hbm [shape: bf16[16,32], index: 0, kind: input, shape index: {}]   ;;  %s2398_s1 = inlined_call_operand.hbm [shape: bf16[32,512], index: 1, kind: input, shape index: {}]   ;;  %s2399_s2 = inlined_call_operand.vmem [shape: f32[1,512], index: 2, kind: input, shape index: {}]   ;;  %s2400_s3 = inlined_call_operand.hbm [shape: bf16[512,512], index: 3, kind: input, shape index: {}]   ;;  %s2401_s4 = inlined_call_operand.vmem [shape: f32[1,512], index: 4, kind: input, shape index: {}]   ;;  %s2402_s5 = inlined_call_operand.hbm [shape: bf16[512,128], index: 5, kind: input, shape index: {}]   ;;  %s2403_s6 = inlined_call_operand.vmem [shape: f32[1,128], index: 6, kind: input, shape index: {}]   ;;  %s2404_s7 = inlined_call_operand.hbm [shape: f32[16,128], index: 7, kind: output, shape index: {}]  }
   0x1   :  { %13 = vsyncpa [#allocation6], 0 }
   0x2   :  { %14 = vsyncpa [#allocation9], 0 }
   0x3   :  { %15 = vsyncpa [#allocation4], 0  ;;  %s2229_s24 = smov [#allocation5]   ;;  %s2111_s28 = scalar_lea.hbm %s2398_s1, 1024 }
   0x4   :  { %s33_s25 = sshll.u32 %s2229_s24, 4  ;;  %p2112_p0 = scmp.ne.s32.totalorder %s2398_s1, %s2111_s28  ;;  %s34_s25 = int_to_ptr.vmem [resolvable:$true] %s33_s25 }
   0x5   :  { %p2115_p1 = scmp.lt.u32.totalorder %s2111_s28, %s2398_s1 }
   0x7   :  { %p2117_p2 = pnand %p2115_p1, %p2112_p0 }
   0x9   :  { %2120 = shalt.err (!%p2117_p2)
}
   0xa   :  { %s2121_s10 = scalar_lea.vmem %s34_s25, 1024  ;;  %p2126_p4 = scmp.lt.s32.totalorder %s34_s25, %s34_s25 }
   0xb   :  { %p2122_p3 = scmp.ne.s32.totalorder %s34_s25, %s2121_s10  ;;  %p2127_p5 = scmp.lt.s32.totalorder %s2121_s10, %s2121_s10 }
   0xd   :  { %p2128_p6 = por %p2127_p5, %p2126_p4 }
   0xf   :  { %p2129_p7 = pnand %p2128_p6, %p2122_p3 }
  0x11   :  { %2132 = shalt.err (!%p2129_p7)
}
  0x12   :  { %s2230_s11 = smov 256   ;;  %s2231_s12 = smov 16  }
  0x13   :  { %39 = dma.hbm_to_vmem [thread:$0]  %s2398_s1, 1024, %s34_s25, [#allocation6], %s2230_s11, %s2230_s11, %s2231_s12  }
  0x14   :  { %s2232_s15 = smov [#allocation2]   ;;  %s2133_s19 = scalar_lea.hbm %s2397_s0, 128 }
  0x15   :  { %s21_s16 = sshll.u32 %s2232_s15, 4  ;;  %p2134_p8 = scmp.ne.s32.totalorder %s2397_s0, %s2133_s19  ;;  %s22_s16 = int_to_ptr.vmem [resolvable:$true] %s21_s16 }
  0x16   :  { %p2137_p9 = scmp.lt.u32.totalorder %s2133_s19, %s2397_s0 }
  0x18   :  { %p2139_p10 = pnand %p2137_p9, %p2134_p8 }
  0x1a   :  { %2142 = shalt.err (!%p2139_p10)
}
  0x1b   :  { %s2143_s24 = scalar_lea.vmem %s22_s16, 128  ;;  %p2148_p12 = scmp.lt.s32.totalorder %s22_s16, %s22_s16 }
  0x1c   :  { %p2144_p11 = scmp.ne.s32.totalorder %s22_s16, %s2143_s24  ;;  %p2149_p13 = scmp.lt.s32.totalorder %s2143_s24, %s2143_s24 }
  0x1e   :  { %p2150_p0 = por %p2149_p13, %p2148_p12 }
  0x20   :  { %p2151_p1 = pnand %p2150_p0, %p2144_p11 }
  0x22   :  { %2154 = shalt.err (!%p2151_p1)
}
  0x23   :  { %s2233_s1 = smov 64   ;;  %s2234_s25 = smov 4  }
  0x24   :  { %27 = dma.hbm_to_vmem [thread:$0]  %s2397_s0, 128, %s22_s16, [#allocation3], %s2233_s1, %s2233_s1, %s2234_s25  }
  0x25   :  { %s2235_s28 = smov [#allocation7]   ;;  %s2236_s30 = smov [#allocation8]  }
  0x26   :  { %s47_s29 = sshll.u32 %s2235_s28, 4  ;;  %s61_s8 = sshll.u32 %s2236_s30, 4  ;;  %s48_s29 = int_to_ptr.vmem [resolvable:$true] %s47_s29  ;;  %s2311_s8 = int_to_ptr.vmem [resolvable:$true] %s61_s8 }
  0x27   :  { %s2155_s13 = scalar_lea.hbm %s2400_s3, 16384 }
  0x28   :  { %p2156_p2 = scmp.ne.s32.totalorder %s2400_s3, %s2155_s13  ;;  %p2159_p3 = scmp.lt.u32.totalorder %s2155_s13, %s2400_s3 }
  0x2a   :  { %p2161_p4 = pnand %p2159_p3, %p2156_p2 }
  0x2c   :  { %2164 = shalt.err (!%p2161_p4)
}
  0x2d   :  { %s2165_s0 = scalar_lea.vmem %s48_s29, 16384  ;;  %p2170_p6 = scmp.lt.s32.totalorder %s48_s29, %s48_s29 }
  0x2e   :  { %p2166_p5 = scmp.ne.s32.totalorder %s48_s29, %s2165_s0  ;;  %p2171_p7 = scmp.lt.s32.totalorder %s2165_s0, %s2165_s0 }
  0x30   :  { %p2172_p8 = por %p2171_p7, %p2170_p6 }
  0x32   :  { %p2173_p9 = pnand %p2172_p8, %p2166_p5 }
  0x34   :  { %2176 = shalt.err (!%p2173_p9)
}
  0x35   :  { %53 = dma.hbm_to_vmem [thread:$0]  %s2400_s3, 16384, %s48_s29, [#allocation6], %s2230_s11, %s2230_s11, %s2231_s12  }
  0x36   :  { %s2177_s22 = scalar_lea.hbm %s2402_s5, 4096 }
  0x37   :  { %p2178_p10 = scmp.ne.s32.totalorder %s2402_s5, %s2177_s22  ;;  %p2181_p11 = scmp.lt.u32.totalorder %s2177_s22, %s2402_s5 }
  0x39   :  { %p2183_p12 = pnand %p2181_p11, %p2178_p10 }
  0x3b   :  { %2186 = shalt.err (!%p2183_p12)
}
  0x3c   :  { %s2187_s28 = scalar_lea.vmem %s2311_s8, 4096  ;;  %p2192_p0 = scmp.lt.s32.totalorder %s2311_s8, %s2311_s8 }
  0x3d   :  { %p2188_p13 = scmp.ne.s32.totalorder %s2311_s8, %s2187_s28  ;;  %p2193_p1 = scmp.lt.s32.totalorder %s2187_s28, %s2187_s28 }
  0x3f   :  { %p2194_p2 = por %p2193_p1, %p2192_p0 }
  0x41   :  { %p2195_p3 = pnand %p2194_p2, %p2188_p13 }
  0x43   :  { %2198 = shalt.err (!%p2195_p3)
}
  0x44   :  { %67 = dma.hbm_to_vmem [thread:$0]  %s2402_s5, 4096, %s2311_s8, [#allocation9], %s2233_s1, %s2233_s1, %s2234_s25  }
  0x45   :  { %2221 = dma.done.wait [#allocation3], 128  }
  0x46   :  { %2222 = vsyncadd [#allocation3], 4294967168 }
  0x47   :  { %2223 = dma.done.wait [#allocation6], 17408  }
  0x48   :  { %2224 = vsyncadd [#allocation6], 4294949888 }
  0x49   :  { %2225 = dma.done.wait [#allocation9], 4096  }
  0x4a   :  { %2226 = vsyncadd [#allocation9], 4294963200  ;;  %v2237_v0 = vmov 0   ;;  %v1866_v1 = vld [vmem:[#allocation5 + $0x4] ss:$16 sps:$4 sm:$0xff]   ;;  %v1872_v5 = vld [vmem:[#allocation2] sm:$0xff]  }
  0x4b   :  { %196 = vmatprep.mubr.bf16.mxu0 %v2237_v0  ;;  %239 = vmatprep.mubr.bf16.mxu1 %v2237_v0  ;;  %v1868_v2 = vld [vmem:[#allocation5] ss:$16 sps:$4 sm:$0xff]   ;;  %v1869_v3 = vld [vmem:[#allocation5 + $0x24] ss:$16 sps:$4 sm:$0xff]   ;;  %v1873_v6 = vld [vmem:[#allocation5 + $0xc] ss:$16 sps:$4 sm:$0xff]  }
  0x4c   :  { %164 = vmatprep.subr.bf16.mxu0 %v1866_v1  ;;  %v1871_v4 = vld [vmem:[#allocation5 + $0x20] ss:$16 sps:$4 sm:$0xff]   ;;  %v1875_v7 = vld [vmem:[#allocation5 + $0x8] ss:$16 sps:$4 sm:$0xff]   ;;  %v1876_v8 = vld [vmem:[#allocation5 + $0x2c] ss:$16 sps:$4 sm:$0xff]   ;;  %207 = vmatprep.subr.bf16.mxu1 %v1873_v6 }
  0x4d   :  { %165 = vmatpush1.bf16.msra.mxu0 %v1868_v2  ;;  %v1878_v9 = vld [vmem:[#allocation5 + $0x28] ss:$16 sps:$4 sm:$0xff]   ;;  %vm160_vm0 = vcmask 261120   ;;  %208 = vmatpush1.bf16.msra.mxu1 %v1875_v7  ;;  %v1879_v10 = vld [vmem:[#allocation7] ss:$16 sps:$4 sm:$0xff]  }
  0x4e   :  { %166 = vmatprep.subr.bf16.mxu0 %v1869_v3  ;;  %v1881_v11 = vld [vmem:[#allocation7 + $0x4] ss:$16 sps:$4 sm:$0xff]   ;;  %209 = vmatprep.subr.bf16.mxu1 %v1876_v8  ;;  %v1884_v12 = vld [vmem:[#allocation7 + $0xc] ss:$16 sps:$4 sm:$0xff]   ;;  %v1882_v14 = vld [vmem:[#allocation7 + $0x8] ss:$16 sps:$4 sm:$0xff]  }
  0x4f   :  { %v1887_v13 = vld [vmem:[#allocation7 + $0x24] ss:$16 sps:$4 sm:$0xff]   ;;  %v1885_v15 = vld [vmem:[#allocation7 + $0x20] ss:$16 sps:$4 sm:$0xff]   ;;  %v1890_v16 = vld [vmem:[#allocation7 + $0x2c] ss:$16 sps:$4 sm:$0xff]  }
  0x50   :  { %v1893_v17 = vld [vmem:[#allocation7 + $0x44] ss:$16 sps:$4 sm:$0xff]   ;;  %v1888_v18 = vld [vmem:[#allocation7 + $0x28] ss:$16 sps:$4 sm:$0xff]   ;;  %v1891_v19 = vld [vmem:[#allocation7 + $0x40] ss:$16 sps:$4 sm:$0xff]  }
  0x51   :  { %167 = vmatpush1.bf16.msra.mxu0 %v1871_v4  ;;  %210 = vmatpush1.bf16.msra.mxu1 %v1878_v9  ;;  %v1896_v20 = vld [vmem:[#allocation7 + $0x4c] ss:$16 sps:$4 sm:$0xff]   ;;  %v1899_v21 = vld [vmem:[#allocation7 + $0x64] ss:$16 sps:$4 sm:$0xff]   ;;  %v1894_v22 = vld [vmem:[#allocation7 + $0x48] ss:$16 sps:$4 sm:$0xff]  }
  0x52   :  { %1052 = vmatprep.subr.bf16.mxu0 %v1881_v11  ;;  %1138 = vmatprep.subr.bf16.mxu1 %v1884_v12  ;;  %v1897_v23 = vld [vmem:[#allocation7 + $0x60] ss:$16 sps:$4 sm:$0xff]   ;;  %v1902_v24 = vld [vmem:[#allocation7 + $0x6c] ss:$16 sps:$4 sm:$0xff]   ;;  %v1905_v25 = vld [vmem:[#allocation7 + $0x84] ss:$16 sps:$4 sm:$0xff]   ;;  %v95_v12 = vlaneseq }
  0x53   :  { %v1900_v26 = vld [vmem:[#allocation7 + $0x68] ss:$16 sps:$4 sm:$0xff]   ;;  %v1903_v27 = vld [vmem:[#allocation7 + $0x80] ss:$16 sps:$4 sm:$0xff]   ;;  %v1908_v28 = vld [vmem:[#allocation7 + $0x8c] ss:$16 sps:$4 sm:$0xff]  }
  0x54   :  { %1631 = vmatmul.mubr.msk.bf16.vlgmr.msra.gmra.mrb[0].mxu0 %vm160_vm0, %v1872_v5  ;;  %1632 = vmatmul.mubr.msk.bf16.vlgmr.msra.gmra.mrb[0].mxu1 %vm160_vm0, %v1872_v5  ;;  %v1911_v29 = vld [vmem:[#allocation7 + $0xa4] ss:$16 sps:$4 sm:$0xff]   ;;  %v1906_v30 = vld [vmem:[#allocation7 + $0x88] ss:$16 sps:$4 sm:$0xff]   ;;  %v1909_v31 = vld [vmem:[#allocation7 + $0xa0] ss:$16 sps:$4 sm:$0xff]  }
  0x55   :  { %1053 = vmatpush1.bf16.msra.mxu0 %v1879_v10  ;;  %1139 = vmatpush1.bf16.msra.mxu1 %v1882_v14  ;;  %v1914_v32 = vld [vmem:[#allocation7 + $0xac] ss:$16 sps:$4 sm:$0xff]   ;;  %v1917_v33 = vld [vmem:[#allocation7 + $0xc4] ss:$16 sps:$4 sm:$0xff]   ;;  %v1912_v34 = vld [vmem:[#allocation7 + $0xa8] ss:$16 sps:$4 sm:$0xff]  }
  0x56   :  { %1054 = vmatprep.subr.bf16.mxu0 %v1887_v13  ;;  %1140 = vmatprep.subr.bf16.mxu1 %v1890_v16  ;;  %v1915_v35 = vld [vmem:[#allocation7 + $0xc0] ss:$16 sps:$4 sm:$0xff]   ;;  %v1920_v36 = vld [vmem:[#allocation7 + $0xcc] ss:$16 sps:$4 sm:$0xff]   ;;  %v1923_v37 = vld [vmem:[#allocation7 + $0xe4] ss:$16 sps:$4 sm:$0xff]  }
  0x57   :  { %v1918_v38 = vld [vmem:[#allocation7 + $0xc8] ss:$16 sps:$4 sm:$0xff]   ;;  %v1921_v39 = vld [vmem:[#allocation7 + $0xe0] ss:$16 sps:$4 sm:$0xff]   ;;  %v1926_v40 = vld [vmem:[#allocation7 + $0xec] ss:$16 sps:$4 sm:$0xff]  }
  0x58   :  { %v1929_v41 = vld [vmem:[#allocation7 + $0x104] ss:$16 sps:$4 sm:$0xff]   ;;  %v1924_v42 = vld [vmem:[#allocation7 + $0xe8] ss:$16 sps:$4 sm:$0xff]   ;;  %v1927_v43 = vld [vmem:[#allocation7 + $0x100] ss:$16 sps:$4 sm:$0xff]  }
  0x59   :  { %1055 = vmatpush1.bf16.msra.mxu0 %v1885_v15  ;;  %1141 = vmatpush1.bf16.msra.mxu1 %v1888_v18  ;;  %v1932_v44 = vld [vmem:[#allocation7 + $0x10c] ss:$16 sps:$4 sm:$0xff]   ;;  %v1935_v45 = vld [vmem:[#allocation7 + $0x124] ss:$16 sps:$4 sm:$0xff]   ;;  %v1930_v46 = vld [vmem:[#allocation7 + $0x108] ss:$16 sps:$4 sm:$0xff]  }
  0x5a   :  { %1056 = vmatprep.subr.bf16.mxu0 %v1893_v17  ;;  %1142 = vmatprep.subr.bf16.mxu1 %v1896_v20  ;;  %v1933_v47 = vld [vmem:[#allocation7 + $0x120] ss:$16 sps:$4 sm:$0xff]   ;;  %v1938_v48 = vld [vmem:[#allocation7 + $0x12c] ss:$16 sps:$4 sm:$0xff]   ;;  %v1941_v49 = vld [vmem:[#allocation7 + $0x144] ss:$16 sps:$4 sm:$0xff]  }
  0x5b   :  { %v1936_v50 = vld [vmem:[#allocation7 + $0x128] ss:$16 sps:$4 sm:$0xff]   ;;  %v1939_v51 = vld [vmem:[#allocation7 + $0x140] ss:$16 sps:$4 sm:$0xff]   ;;  %v1944_v52 = vld [vmem:[#allocation7 + $0x14c] ss:$16 sps:$4 sm:$0xff]  }
  0x5c   :  { %v1947_v53 = vld [vmem:[#allocation7 + $0x164] ss:$16 sps:$4 sm:$0xff]   ;;  %v1942_v54 = vld [vmem:[#allocation7 + $0x148] ss:$16 sps:$4 sm:$0xff]   ;;  %v1945_v55 = vld [vmem:[#allocation7 + $0x160] ss:$16 sps:$4 sm:$0xff]  }
  0x5d   :  { %1057 = vmatpush1.bf16.msra.mxu0 %v1891_v19  ;;  %1143 = vmatpush1.bf16.msra.mxu1 %v1894_v22  ;;  %v1950_v56 = vld [vmem:[#allocation7 + $0x16c] ss:$16 sps:$4 sm:$0xff]   ;;  %v1953_v57 = vld [vmem:[#allocation7 + $0x184] ss:$16 sps:$4 sm:$0xff]   ;;  %v1948_v58 = vld [vmem:[#allocation7 + $0x168] ss:$16 sps:$4 sm:$0xff]  }
  0x5e   :  { %1058 = vmatprep.subr.bf16.mxu0 %v1899_v21  ;;  %1144 = vmatprep.subr.bf16.mxu1 %v1902_v24  ;;  %v1951_v59 = vld [vmem:[#allocation7 + $0x180] ss:$16 sps:$4 sm:$0xff]   ;;  %v1956_v60 = vld [vmem:[#allocation7 + $0x18c] ss:$16 sps:$4 sm:$0xff]   ;;  %v1959_v61 = vld [vmem:[#allocation7 + $0x1a4] ss:$16 sps:$4 sm:$0xff]  }
  0x5f   :  { %v1954_v62 = vld [vmem:[#allocation7 + $0x188] ss:$16 sps:$4 sm:$0xff]   ;;  %v1957_v63 = vld [vmem:[#allocation7 + $0x1a0] ss:$16 sps:$4 sm:$0xff]   ;;  %v1962_v0 = vld [vmem:[#allocation7 + $0x1ac] ss:$16 sps:$4 sm:$0xff]  }
  0x60   :  { %v1960_v1 = vld [vmem:[#allocation7 + $0x1a8] ss:$16 sps:$4 sm:$0xff]   ;;  %v1965_v2 = vld [vmem:[#allocation7 + $0x1c4] ss:$16 sps:$4 sm:$0xff]   ;;  %v1968_v3 = vld [vmem:[#allocation7 + $0x1cc] ss:$16 sps:$4 sm:$0xff]  }
  0x61   :  { %1059 = vmatpush1.bf16.msra.mxu0 %v1897_v23  ;;  %1145 = vmatpush1.bf16.msra.mxu1 %v1900_v26  ;;  %v1963_v4 = vld [vmem:[#allocation7 + $0x1c0] ss:$16 sps:$4 sm:$0xff]   ;;  %v1966_v5 = vld [vmem:[#allocation7 + $0x1c8] ss:$16 sps:$4 sm:$0xff]   ;;  %v1971_v6 = vld [vmem:[#allocation7 + $0x1e4] ss:$16 sps:$4 sm:$0xff]  }
  0x62   :  { %1060 = vmatprep.subr.bf16.mxu0 %v1905_v25  ;;  %1146 = vmatprep.subr.bf16.mxu1 %v1908_v28  ;;  %v1974_v7 = vld [vmem:[#allocation7 + $0x1ec] ss:$16 sps:$4 sm:$0xff]   ;;  %v1969_v8 = vld [vmem:[#allocation7 + $0x1e0] ss:$16 sps:$4 sm:$0xff]   ;;  %v1972_v9 = vld [vmem:[#allocation7 + $0x1e8] ss:$16 sps:$4 sm:$0xff]  }
  0x63   :  { %v1977_v10 = vld [vmem:[#allocation7 + $0x204] ss:$16 sps:$4 sm:$0xff]   ;;  %v1980_v11 = vld [vmem:[#allocation7 + $0x20c] ss:$16 sps:$4 sm:$0xff]   ;;  %v2350_v13 = vshrl.u32 %v95_v12, 7 }
  0x64   :  { %v93_v15 = vld [vmem:[%s2399_s2] sm:$0xf] }
  0x65   :  { %1061 = vmatpush1.bf16.msra.mxu0 %v1903_v27  ;;  %1147 = vmatpush1.bf16.msra.mxu1 %v1906_v30  ;;  %v97_v14 = vsub.s32 0, %v2350_v13  ;;  %v101_v16 = vsub.s32 1, %v2350_v13  ;;  %v105_v18 = vsub.s32 2, %v2350_v13  ;;  %v109_v20 = vsub.s32 3, %v2350_v13  ;;  %v2014_v12 = vld [vmem:[#allocation7 + $0x2c8] ss:$16 sps:$4 sm:$0xff]  }
  0x66   :  { %1062 = vmatprep.subr.bf16.mxu0 %v1911_v29  ;;  %1148 = vmatprep.subr.bf16.mxu1 %v1914_v32 }
  0x67   :  { %v98_v17 = vrot.slane %v93_v15, %v97_v14  ;;  %v102_v19 = vrot.slane %v93_v15, %v101_v16  ;;  %v106_v24 = vrot.slane %v93_v15, %v105_v18  ;;  %v110_v27 = vrot.slane %v93_v15, %v109_v20  ;;  %v2019_v15 = vld [vmem:[#allocation7 + $0x2e4] ss:$16 sps:$4 sm:$0xff]  }
  0x69   :  { %1063 = vmatpush1.bf16.msra.mxu0 %v1909_v31  ;;  %1149 = vmatpush1.bf16.msra.mxu1 %v1912_v34 }
  0x6a   :  { %1064 = vmatprep.subr.bf16.mxu0 %v1917_v33  ;;  %1150 = vmatprep.subr.bf16.mxu1 %v1920_v36 }
  0x6d   :  { %1065 = vmatpush1.bf16.msra.mxu0 %v1915_v35  ;;  %1151 = vmatpush1.bf16.msra.mxu1 %v1918_v38 }
  0x6e   :  { %1066 = vmatprep.subr.bf16.mxu0 %v1923_v37  ;;  %1152 = vmatprep.subr.bf16.mxu1 %v1926_v40 }
  0x71   :  { %1067 = vmatpush1.bf16.msra.mxu0 %v1921_v39  ;;  %1153 = vmatpush1.bf16.msra.mxu1 %v1924_v42 }
  0x72   :  { %1068 = vmatprep.subr.bf16.mxu0 %v1929_v41  ;;  %1154 = vmatprep.subr.bf16.mxu1 %v1932_v44 }
  0x75   :  { %1069 = vmatpush1.bf16.msra.mxu0 %v1927_v43  ;;  %1155 = vmatpush1.bf16.msra.mxu1 %v1930_v46  ;;  %v1978_v46 = vld [vmem:[#allocation7 + $0x208] ss:$16 sps:$4 sm:$0xff]  }
  0x76   :  { %1070 = vmatprep.subr.bf16.mxu0 %v1935_v45  ;;  %1156 = vmatprep.subr.bf16.mxu1 %v1938_v48  ;;  %v1975_v45 = vld [vmem:[#allocation7 + $0x200] ss:$16 sps:$4 sm:$0xff]  }
  0x79   :  { %1071 = vmatpush1.bf16.msra.mxu0 %v1933_v47  ;;  %1157 = vmatpush1.bf16.msra.mxu1 %v1936_v50  ;;  %v1986_v50 = vld [vmem:[#allocation7 + $0x22c] ss:$16 sps:$4 sm:$0xff]  }
  0x7a   :  { %1072 = vmatprep.subr.bf16.mxu0 %v1941_v49  ;;  %1158 = vmatprep.subr.bf16.mxu1 %v1944_v52  ;;  %v1983_v49 = vld [vmem:[#allocation7 + $0x224] ss:$16 sps:$4 sm:$0xff]  }
  0x7d   :  { %1073 = vmatpush1.bf16.msra.mxu0 %v1939_v51  ;;  %1159 = vmatpush1.bf16.msra.mxu1 %v1942_v54  ;;  %v1981_v54 = vld [vmem:[#allocation7 + $0x220] ss:$16 sps:$4 sm:$0xff]  }
  0x7e   :  { %1074 = vmatprep.subr.bf16.mxu0 %v1947_v53  ;;  %1160 = vmatprep.subr.bf16.mxu1 %v1950_v56 }
  0x81   :  { %1075 = vmatpush1.bf16.msra.mxu0 %v1945_v55  ;;  %1161 = vmatpush1.bf16.msra.mxu1 %v1948_v58  ;;  %v1984_v55 = vld [vmem:[#allocation7 + $0x228] ss:$16 sps:$4 sm:$0xff]   ;;  %v1992_v58 = vld [vmem:[#allocation7 + $0x24c] ss:$16 sps:$4 sm:$0xff]  }
  0x82   :  { %1076 = vmatprep.subr.bf16.mxu0 %v1953_v57  ;;  %1162 = vmatprep.subr.bf16.mxu1 %v1956_v60  ;;  %v1989_v57 = vld [vmem:[#allocation7 + $0x244] ss:$16 sps:$4 sm:$0xff]   ;;  %v1990_v60 = vld [vmem:[#allocation7 + $0x248] ss:$16 sps:$4 sm:$0xff]  }
  0x85   :  { %1077 = vmatpush1.bf16.msra.mxu0 %v1951_v59  ;;  %1163 = vmatpush1.bf16.msra.mxu1 %v1954_v62  ;;  %v1987_v59 = vld [vmem:[#allocation7 + $0x240] ss:$16 sps:$4 sm:$0xff]   ;;  %v1998_v62 = vld [vmem:[#allocation7 + $0x26c] ss:$16 sps:$4 sm:$0xff]  }
  0x86   :  { %1078 = vmatprep.subr.bf16.mxu0 %v1959_v61  ;;  %1164 = vmatprep.subr.bf16.mxu1 %v1962_v0  ;;  %v1995_v61 = vld [vmem:[#allocation7 + $0x264] ss:$16 sps:$4 sm:$0xff]   ;;  %v1996_v0 = vld [vmem:[#allocation7 + $0x268] ss:$16 sps:$4 sm:$0xff]  }
  0x89   :  { %1079 = vmatpush1.bf16.msra.mxu0 %v1957_v63  ;;  %1165 = vmatpush1.bf16.msra.mxu1 %v1960_v1  ;;  %v1993_v63 = vld [vmem:[#allocation7 + $0x260] ss:$16 sps:$4 sm:$0xff]   ;;  %v2001_v1 = vld [vmem:[#allocation7 + $0x284] ss:$16 sps:$4 sm:$0xff]  }
  0x8a   :  { %1080 = vmatprep.subr.bf16.mxu0 %v1965_v2  ;;  %1166 = vmatprep.subr.bf16.mxu1 %v1968_v3  ;;  %v2004_v2 = vld [vmem:[#allocation7 + $0x28c] ss:$16 sps:$4 sm:$0xff]   ;;  %v1999_v3 = vld [vmem:[#allocation7 + $0x280] ss:$16 sps:$4 sm:$0xff]  }
  0x8d   :  { %1081 = vmatpush1.bf16.msra.mxu0 %v1963_v4  ;;  %1167 = vmatpush1.bf16.msra.mxu1 %v1966_v5  ;;  %v2002_v4 = vld [vmem:[#allocation7 + $0x288] ss:$16 sps:$4 sm:$0xff]   ;;  %v2007_v5 = vld [vmem:[#allocation7 + $0x2a4] ss:$16 sps:$4 sm:$0xff]  }
  0x8e   :  { %1082 = vmatprep.subr.bf16.mxu0 %v1971_v6  ;;  %1168 = vmatprep.subr.bf16.mxu1 %v1974_v7  ;;  %v2010_v6 = vld [vmem:[#allocation7 + $0x2ac] ss:$16 sps:$4 sm:$0xff]   ;;  %v2005_v7 = vld [vmem:[#allocation7 + $0x2a0] ss:$16 sps:$4 sm:$0xff]  }
  0x91   :  { %1083 = vmatpush1.bf16.msra.mxu0 %v1969_v8  ;;  %1169 = vmatpush1.bf16.msra.mxu1 %v1972_v9  ;;  %v2008_v8 = vld [vmem:[#allocation7 + $0x2a8] ss:$16 sps:$4 sm:$0xff]   ;;  %v2013_v9 = vld [vmem:[#allocation7 + $0x2c4] ss:$16 sps:$4 sm:$0xff]  }
  0x92   :  { %1095 = vmatprep.subr.bf16.mxu0 %v1977_v10  ;;  %1181 = vmatprep.subr.bf16.mxu1 %v1980_v11  ;;  %v2016_v10 = vld [vmem:[#allocation7 + $0x2cc] ss:$16 sps:$4 sm:$0xff]   ;;  %v2011_v11 = vld [vmem:[#allocation7 + $0x2c0] ss:$16 sps:$4 sm:$0xff]  }
 0x127   :  { %v198_v21 = vpop.f32.mrb[0].mxu0  ;;  %v241_v31 = vpop.f32.mrb[0].mxu1 }
 0x128   :  { %v199_v22 = vadd.f32 %v198_v21, %v98_v17  ;;  %v200_v23 = vpop.f32.mrb[1].mxu0  ;;  %v242_v34 = vadd.f32 %v241_v31, %v106_v24  ;;  %v243_v35 = vpop.f32.mrb[1].mxu1  ;;  %v2020_v21 = vld [vmem:[#allocation7 + $0x2e8] ss:$16 sps:$4 sm:$0xff]   ;;  %v2040_v31 = vld [vmem:[#allocation7 + $0x34c] ss:$16 sps:$4 sm:$0xff]  }
 0x129   :  { %v201_v25 = vadd.f32 %v200_v23, %v102_v19  ;;  %v202_v26 = vpop.f32.mrb[2].mxu0  ;;  %v244_v38 = vadd.f32 %v243_v35, %v110_v27  ;;  %v245_v39 = vpop.f32.mrb[2].mxu1  ;;  %v2028_v23 = vld [vmem:[#allocation7 + $0x30c] ss:$16 sps:$4 sm:$0xff]  }
 0x12a   :  { %v203_v28 = vadd.f32 %v202_v26, %v98_v17  ;;  %v204_v29 = vpop.f32.mrb[3].mxu0  ;;  %v250_v32 = vmax.f32 %v199_v22, 0.0  ;;  %v252_v41 = vmax.f32 %v242_v34, 0.0  ;;  %v246_v42 = vadd.f32 %v245_v39, %v106_v24  ;;  %v247_v43 = vpop.f32.mrb[3].mxu1  ;;  %v2022_v17 = vld [vmem:[#allocation7 + $0x2ec] ss:$16 sps:$4 sm:$0xff]  }
 0x12b   :  { %v205_v30 = vadd.f32 %v204_v29, %v102_v19  ;;  %v251_v36 = vmax.f32 %v201_v25, 0.0  ;;  %v253_v47 = vmax.f32 %v244_v38, 0.0  ;;  %v248_v48 = vadd.f32 %v247_v43, %v110_v27  ;;  %v2017_v19 = vld [vmem:[#allocation7 + $0x2e0] ss:$16 sps:$4 sm:$0xff]   ;;  %v2025_v22 = vld [vmem:[#allocation7 + $0x304] ss:$16 sps:$4 sm:$0xff]  }
 0x12c   :  { %v254_v33 = vmax.f32 %v203_v28, 0.0  ;;  %v256_v51 = vmax.f32 %v246_v42, 0.0  ;;  %v2023_v24 = vld [vmem:[#allocation7 + $0x300] ss:$16 sps:$4 sm:$0xff]   ;;  %v2026_v25 = vld [vmem:[#allocation7 + $0x308] ss:$16 sps:$4 sm:$0xff]  }
 0x12d   :  { %v255_v37 = vmax.f32 %v205_v30, 0.0  ;;  %v257_v52 = vmax.f32 %v248_v48, 0.0  ;;  %v2031_v26 = vld [vmem:[#allocation7 + $0x324] ss:$16 sps:$4 sm:$0xff]   ;;  %v2034_v27 = vld [vmem:[#allocation7 + $0x32c] ss:$16 sps:$4 sm:$0xff]  }
 0x12e   :  { %v258_v40 = vpack.c.bf16 %v254_v33, %v250_v32  ;;  %v2367_v53 = vpack.c.bf16 %v256_v51, %v252_v41  ;;  %v2029_v28 = vld [vmem:[#allocation7 + $0x320] ss:$16 sps:$4 sm:$0xff]   ;;  %v2032_v29 = vld [vmem:[#allocation7 + $0x328] ss:$16 sps:$4 sm:$0xff]   ;;  %v2037_v30 = vld [vmem:[#allocation7 + $0x344] ss:$16 sps:$4 sm:$0xff]  }
 0x12f   :  { %v259_v44 = vpack.c.bf16 %v255_v37, %v251_v36  ;;  %v261_v56 = vpack.c.bf16 %v257_v52, %v253_v47  ;;  %v2035_v32 = vld [vmem:[#allocation7 + $0x340] ss:$16 sps:$4 sm:$0xff]   ;;  %v2038_v33 = vld [vmem:[#allocation7 + $0x348] ss:$16 sps:$4 sm:$0xff]   ;;  %v2043_v34 = vld [vmem:[#allocation7 + $0x364] ss:$16 sps:$4 sm:$0xff]  }
 0x130   :  { %v2046_v35 = vld [vmem:[#allocation7 + $0x36c] ss:$16 sps:$4 sm:$0xff]   ;;  %v2041_v36 = vld [vmem:[#allocation7 + $0x360] ss:$16 sps:$4 sm:$0xff]   ;;  %v2044_v37 = vld [vmem:[#allocation7 + $0x368] ss:$16 sps:$4 sm:$0xff]  }
 0x131   :  { %1084 = vmatprep.mubr.bf16.mxu0 %v259_v44  ;;  %1170 = vmatprep.mubr.bf16.mxu1 %v259_v44  ;;  %v2049_v38 = vld [vmem:[#allocation7 + $0x384] ss:$16 sps:$4 sm:$0xff]   ;;  %v2052_v39 = vld [vmem:[#allocation7 + $0x38c] ss:$16 sps:$4 sm:$0xff]   ;;  %v2050_v41 = vld [vmem:[#allocation7 + $0x388] ss:$16 sps:$4 sm:$0xff]  }
 0x132   :  { %1085 = vmatmul.mubr.bf16.vlgmr.msra.gmra.mrb[4].mxu0 %v258_v40  ;;  %1171 = vmatmul.mubr.bf16.vlgmr.msra.gmra.mrb[4].mxu1 %v258_v40  ;;  %v2047_v40 = vld [vmem:[#allocation7 + $0x380] ss:$16 sps:$4 sm:$0xff]   ;;  %v2055_v42 = vld [vmem:[#allocation7 + $0x3a4] ss:$16 sps:$4 sm:$0xff]   ;;  %v2058_v43 = vld [vmem:[#allocation7 + $0x3ac] ss:$16 sps:$4 sm:$0xff]  }
 0x133   :  { %1096 = vmatpush1.bf16.msra.mxu0 %v1975_v45  ;;  %1182 = vmatpush1.bf16.msra.mxu1 %v1978_v46  ;;  %v2053_v44 = vld [vmem:[#allocation7 + $0x3a0] ss:$16 sps:$4 sm:$0xff]   ;;  %v2056_v45 = vld [vmem:[#allocation7 + $0x3a8] ss:$16 sps:$4 sm:$0xff]   ;;  %v2061_v46 = vld [vmem:[#allocation7 + $0x3c4] ss:$16 sps:$4 sm:$0xff]  }
 0x134   :  { %1097 = vmatprep.subr.bf16.mxu0 %v1983_v49  ;;  %1183 = vmatprep.subr.bf16.mxu1 %v1986_v50  ;;  %v2064_v47 = vld [vmem:[#allocation7 + $0x3cc] ss:$16 sps:$4 sm:$0xff]   ;;  %v2059_v48 = vld [vmem:[#allocation7 + $0x3c0] ss:$16 sps:$4 sm:$0xff]   ;;  %v2062_v49 = vld [vmem:[#allocation7 + $0x3c8] ss:$16 sps:$4 sm:$0xff]  }
 0x135   :  { %1127 = vmatprep.mubr.bf16.mxu0 %v261_v56  ;;  %1213 = vmatprep.mubr.bf16.mxu1 %v261_v56  ;;  %v2067_v50 = vld [vmem:[#allocation7 + $0x3e4] ss:$16 sps:$4 sm:$0xff]   ;;  %v2070_v51 = vld [vmem:[#allocation7 + $0x3ec] ss:$16 sps:$4 sm:$0xff]   ;;  %v2065_v52 = vld [vmem:[#allocation7 + $0x3e0] ss:$16 sps:$4 sm:$0xff]  }
 0x136   :  { %v2072_v56 = vld [vmem:[#allocation8 + $0xc0] sm:$0xff]  }
 0x137   :  { %1098 = vmatpush1.bf16.msra.mxu0 %v1981_v54  ;;  %1184 = vmatpush1.bf16.msra.mxu1 %v1984_v55  ;;  %v2068_v54 = vld [vmem:[#allocation7 + $0x3e8] ss:$16 sps:$4 sm:$0xff]   ;;  %v2071_v55 = vld [vmem:[#allocation8 + $0x40] sm:$0xff]  }
 0x138   :  { %1099 = vmatprep.subr.bf16.mxu0 %v1989_v57  ;;  %1185 = vmatprep.subr.bf16.mxu1 %v1992_v58  ;;  %v2073_v57 = vld [vmem:[#allocation8] sm:$0xff]  }
 0x139   :  { %v2074_v58 = vld [vmem:[#allocation8 + $0x80] sm:$0xff]  }
 0x13b   :  { %1100 = vmatpush1.bf16.msra.mxu0 %v1987_v59  ;;  %1186 = vmatpush1.bf16.msra.mxu1 %v1990_v60  ;;  %v2075_v59 = vld [vmem:[#allocation8 + $0x48] sm:$0xff]  }
 0x13c   :  { %1101 = vmatprep.subr.bf16.mxu0 %v1995_v61  ;;  %1187 = vmatprep.subr.bf16.mxu1 %v1998_v62  ;;  %v2076_v60 = vld [vmem:[#allocation8 + $0xc8] sm:$0xff]  }
 0x13d   :  { %v2077_v61 = vld [vmem:[#allocation8 + $0x8] sm:$0xff]  }
 0x13e   :  { %v2078_v62 = vld [vmem:[#allocation8 + $0x88] sm:$0xff]  }
 0x13f   :  { %1102 = vmatpush1.bf16.msra.mxu0 %v1993_v63  ;;  %1188 = vmatpush1.bf16.msra.mxu1 %v1996_v0  ;;  %v2079_v63 = vld [vmem:[#allocation8 + $0x50] sm:$0xff]  }
 0x140   :  { %1103 = vmatprep.subr.bf16.mxu0 %v2001_v1  ;;  %1189 = vmatprep.subr.bf16.mxu1 %v2004_v2  ;;  %v2080_v0 = vld [vmem:[#allocation8 + $0xd0] sm:$0xff]  }
 0x141   :  { %v2081_v1 = vld [vmem:[#allocation8 + $0x10] sm:$0xff]  }
 0x142   :  { %v2082_v2 = vld [vmem:[#allocation8 + $0x90] sm:$0xff]  }
 0x143   :  { %1104 = vmatpush1.bf16.msra.mxu0 %v1999_v3  ;;  %1190 = vmatpush1.bf16.msra.mxu1 %v2002_v4  ;;  %v2083_v3 = vld [vmem:[#allocation8 + $0x58] sm:$0xff]  }
 0x144   :  { %1105 = vmatprep.subr.bf16.mxu0 %v2007_v5  ;;  %1191 = vmatprep.subr.bf16.mxu1 %v2010_v6  ;;  %v2084_v4 = vld [vmem:[#allocation8 + $0xd8] sm:$0xff]   ;;  %v2087_v6 = vld [vmem:[#allocation8 + $0x60] sm:$0xff]  }
 0x145   :  { %v2085_v5 = vld [vmem:[#allocation8 + $0x18] sm:$0xff]  }
 0x147   :  { %1106 = vmatpush1.bf16.msra.mxu0 %v2005_v7  ;;  %1192 = vmatpush1.bf16.msra.mxu1 %v2008_v8  ;;  %v2088_v7 = vld [vmem:[#allocation8 + $0xe0] sm:$0xff]  }
 0x148   :  { %1107 = vmatprep.subr.bf16.mxu0 %v2013_v9  ;;  %1193 = vmatprep.subr.bf16.mxu1 %v2016_v10  ;;  %v2089_v8 = vld [vmem:[#allocation8 + $0x20] sm:$0xff]   ;;  %v2091_v10 = vld [vmem:[#allocation8 + $0x68] sm:$0xff]  }
 0x149   :  { %v2090_v9 = vld [vmem:[#allocation8 + $0xa0] sm:$0xff]  }
 0x14b   :  { %1108 = vmatpush1.bf16.msra.mxu0 %v2011_v11  ;;  %1194 = vmatpush1.bf16.msra.mxu1 %v2014_v12  ;;  %v2092_v11 = vld [vmem:[#allocation8 + $0xe8] sm:$0xff]  }
 0x14c   :  { %1109 = vmatprep.subr.bf16.mxu0 %v2019_v15  ;;  %1195 = vmatprep.subr.bf16.mxu1 %v2022_v17  ;;  %v2093_v12 = vld [vmem:[#allocation8 + $0x28] sm:$0xff]   ;;  %v2095_v17 = vld [vmem:[#allocation8 + $0x70] sm:$0xff]  }
 0x14d   :  { %v2094_v15 = vld [vmem:[#allocation8 + $0xa8] sm:$0xff]  }
 0x14f   :  { %1110 = vmatpush1.bf16.msra.mxu0 %v2017_v19  ;;  %1196 = vmatpush1.bf16.msra.mxu1 %v2020_v21  ;;  %v2096_v19 = vld [vmem:[#allocation8 + $0xf0] sm:$0xff]  }
 0x150   :  { %1111 = vmatprep.subr.bf16.mxu0 %v2025_v22  ;;  %1197 = vmatprep.subr.bf16.mxu1 %v2028_v23  ;;  %v2097_v21 = vld [vmem:[#allocation8 + $0x30] sm:$0xff]   ;;  %v2099_v23 = vld [vmem:[#allocation8 + $0x78] sm:$0xff]  }
 0x151   :  { %v2098_v22 = vld [vmem:[#allocation8 + $0xb0] sm:$0xff]  }
 0x153   :  { %1112 = vmatpush1.bf16.msra.mxu0 %v2023_v24  ;;  %1198 = vmatpush1.bf16.msra.mxu1 %v2026_v25  ;;  %v2100_v24 = vld [vmem:[#allocation8 + $0xf8] sm:$0xff]  }
 0x154   :  { %1113 = vmatprep.subr.bf16.mxu0 %v2031_v26  ;;  %1199 = vmatprep.subr.bf16.mxu1 %v2034_v27  ;;  %v2101_v25 = vld [vmem:[#allocation8 + $0x38] sm:$0xff]  }
 0x155   :  { %v2102_v26 = vld [vmem:[#allocation8 + $0xb8] sm:$0xff]  }
 0x156   :  { %v390_v27 = vld [vmem:[%s2401_s4] sm:$0xf] }
 0x157   :  { %1114 = vmatpush1.bf16.msra.mxu0 %v2029_v28  ;;  %1200 = vmatpush1.bf16.msra.mxu1 %v2032_v29  ;;  %v395_v28 = vrot.slane %v390_v27, %v97_v14  ;;  %v403_v29 = vrot.slane %v390_v27, %v105_v18 }
 0x158   :  { %1115 = vmatprep.subr.bf16.mxu0 %v2037_v30  ;;  %1201 = vmatprep.subr.bf16.mxu1 %v2040_v31  ;;  %v399_v30 = vrot.slane %v390_v27, %v101_v16  ;;  %v407_v31 = vrot.slane %v390_v27, %v109_v20 }
 0x15b   :  { %1116 = vmatpush1.bf16.msra.mxu0 %v2035_v32  ;;  %1202 = vmatpush1.bf16.msra.mxu1 %v2038_v33 }
 0x15c   :  { %1117 = vmatprep.subr.bf16.mxu0 %v2043_v34  ;;  %1203 = vmatprep.subr.bf16.mxu1 %v2046_v35 }
 0x15f   :  { %1118 = vmatpush1.bf16.msra.mxu0 %v2041_v36  ;;  %1204 = vmatpush1.bf16.msra.mxu1 %v2044_v37 }
 0x160   :  { %1119 = vmatprep.subr.bf16.mxu0 %v2049_v38  ;;  %1205 = vmatprep.subr.bf16.mxu1 %v2052_v39 }
 0x163   :  { %1120 = vmatpush1.bf16.msra.mxu0 %v2047_v40  ;;  %1206 = vmatpush1.bf16.msra.mxu1 %v2050_v41 }
 0x164   :  { %1121 = vmatprep.subr.bf16.mxu0 %v2055_v42  ;;  %1207 = vmatprep.subr.bf16.mxu1 %v2058_v43 }
 0x167   :  { %1122 = vmatpush1.bf16.msra.mxu0 %v2053_v44  ;;  %1208 = vmatpush1.bf16.msra.mxu1 %v2056_v45 }
 0x168   :  { %1123 = vmatprep.subr.bf16.mxu0 %v2061_v46  ;;  %1209 = vmatprep.subr.bf16.mxu1 %v2064_v47 }
 0x16b   :  { %1124 = vmatpush1.bf16.msra.mxu0 %v2059_v48  ;;  %1210 = vmatpush1.bf16.msra.mxu1 %v2062_v49 }
 0x16c   :  { %1125 = vmatprep.subr.bf16.mxu0 %v2067_v50  ;;  %1211 = vmatprep.subr.bf16.mxu1 %v2070_v51 }
 0x16f   :  { %1126 = vmatpush1.bf16.msra.mxu0 %v2065_v52  ;;  %1212 = vmatpush1.bf16.msra.mxu1 %v2068_v54 }
 0x170   :  { %1794 = vmatprep.subr.bf16.mxu0 %v2071_v55  ;;  %1816 = vmatprep.subr.bf16.mxu1 %v2072_v56 }
 0x172   :  { %1128 = vmatmul.mubr.bf16.vlgmr.msra.gmra.mrb[4].mxu0 %v2367_v53  ;;  %1214 = vmatmul.mubr.bf16.vlgmr.msra.gmra.mrb[4].mxu1 %v2367_v53  ;;  %v2086_v53 = vld [vmem:[#allocation8 + $0x98] sm:$0xff]  }
 0x173   :  { %1795 = vmatpush3.bf16.msra.mxu0 %v2073_v57  ;;  %1817 = vmatpush3.bf16.msra.mxu1 %v2074_v58  ;;  %v1761_v58 = vld [vmem:[%s2403_s6] ss:$0 sm:$0xff]  ;;  %s2238_s6 = smov [#allocation10]  }
 0x174   :  { %1796 = vmatprep.subr.bf16.mxu0 %v2075_v59  ;;  %1818 = vmatprep.subr.bf16.mxu1 %v2076_v60  ;;  %s1608_s29 = sshll.u32 %s2238_s6, 4  ;;  %s1609_s29 = int_to_ptr.vmem [resolvable:$true] %s1608_s29 }
 0x175   :  { %s2199_s30 = scalar_lea.vmem %s1609_s29, 256  ;;  %p2204_p5 = scmp.lt.s32.totalorder %s1609_s29, %s1609_s29 }
 0x176   :  { %p2200_p4 = scmp.ne.s32.totalorder %s1609_s29, %s2199_s30  ;;  %p2205_p6 = scmp.lt.s32.totalorder %s2199_s30, %s2199_s30 }
 0x177   :  { %1797 = vmatpush3.bf16.msra.mxu0 %v2077_v61  ;;  %1819 = vmatpush3.bf16.msra.mxu1 %v2078_v62 }
 0x178   :  { %1798 = vmatprep.subr.bf16.mxu0 %v2079_v63  ;;  %1820 = vmatprep.subr.bf16.mxu1 %v2080_v0  ;;  %p2206_p7 = por %p2205_p6, %p2204_p5 }
 0x17a   :  { %p2207_p8 = pnand %p2206_p7, %p2200_p4 }
 0x17b   :  { %1799 = vmatpush3.bf16.msra.mxu0 %v2081_v1  ;;  %1821 = vmatpush3.bf16.msra.mxu1 %v2082_v2 }
 0x17c   :  { %1800 = vmatprep.subr.bf16.mxu0 %v2083_v3  ;;  %1822 = vmatprep.subr.bf16.mxu1 %v2084_v4 }
 0x17f   :  { %1801 = vmatpush3.bf16.msra.mxu0 %v2085_v5  ;;  %1823 = vmatpush3.bf16.msra.mxu1 %v2086_v53 }
 0x180   :  { %1802 = vmatprep.subr.bf16.mxu0 %v2087_v6  ;;  %1824 = vmatprep.subr.bf16.mxu1 %v2088_v7 }
 0x183   :  { %1803 = vmatpush3.bf16.msra.mxu0 %v2089_v8  ;;  %1825 = vmatpush3.bf16.msra.mxu1 %v2090_v9 }
 0x184   :  { %1804 = vmatprep.subr.bf16.mxu0 %v2091_v10  ;;  %1826 = vmatprep.subr.bf16.mxu1 %v2092_v11 }
 0x187   :  { %1805 = vmatpush3.bf16.msra.mxu0 %v2093_v12  ;;  %1827 = vmatpush3.bf16.msra.mxu1 %v2094_v15 }
 0x188   :  { %1806 = vmatprep.subr.bf16.mxu0 %v2095_v17  ;;  %1828 = vmatprep.subr.bf16.mxu1 %v2096_v19 }
 0x18b   :  { %1807 = vmatpush3.bf16.msra.mxu0 %v2097_v21  ;;  %1829 = vmatpush3.bf16.msra.mxu1 %v2098_v22 }
 0x18c   :  { %1808 = vmatprep.subr.bf16.mxu0 %v2099_v23  ;;  %1830 = vmatprep.subr.bf16.mxu1 %v2100_v24 }
 0x18f   :  { %1809 = vmatpush3.bf16.msra.mxu0 %v2101_v25  ;;  %1831 = vmatpush3.bf16.msra.mxu1 %v2102_v26 }
 0x245   :  { %v1129_v32 = vpop.f32.mrb[4].mxu0  ;;  %v1215_v33 = vpop.f32.mrb[4].mxu1 }
 0x246   :  { %v1838_v34 = vadd.f32 %v1129_v32, %v395_v28  ;;  %v1842_v35 = vadd.f32 %v1215_v33, %v403_v29  ;;  %v1131_v36 = vpop.f32.mrb[5].mxu0  ;;  %v1217_v37 = vpop.f32.mrb[5].mxu1 }
 0x247   :  { %v1839_v38 = vadd.f32 %v1131_v36, %v399_v30  ;;  %v1843_v39 = vadd.f32 %v1217_v37, %v407_v31  ;;  %v1133_v40 = vpop.f32.mrb[6].mxu0  ;;  %v1219_v41 = vpop.f32.mrb[6].mxu1 }
 0x248   :  { %v1840_v14 = vadd.f32 %v1133_v40, %v395_v28  ;;  %v1844_v42 = vadd.f32 %v1219_v41, %v403_v29  ;;  %v1135_v43 = vpop.f32.mrb[7].mxu0  ;;  %v1221_v18 = vpop.f32.mrb[7].mxu1  ;;  %v1224_v16 = vmax.f32 %v1838_v34, 0.0  ;;  %v1226_v46 = vmax.f32 %v1842_v35, 0.0 }
 0x249   :  { %v1841_v44 = vadd.f32 %v1135_v43, %v399_v30  ;;  %v1845_v45 = vadd.f32 %v1221_v18, %v407_v31  ;;  %v1225_v47 = vmax.f32 %v1839_v38, 0.0  ;;  %v1227_v48 = vmax.f32 %v1843_v39, 0.0 }
 0x24a   :  { %v1228_v13 = vmax.f32 %v1840_v14, 0.0  ;;  %v1230_v20 = vmax.f32 %v1844_v42, 0.0 }
 0x24b   :  { %v1229_v49 = vmax.f32 %v1841_v44, 0.0  ;;  %v1231_v50 = vmax.f32 %v1845_v45, 0.0 }
 0x24c   :  { %v1232_v51 = vpack.c.bf16 %v1228_v13, %v1224_v16  ;;  %v1234_v52 = vpack.c.bf16 %v1230_v20, %v1226_v46 }
 0x24d   :  { %v1233_v54 = vpack.c.bf16 %v1229_v49, %v1225_v47  ;;  %v1235_v55 = vpack.c.bf16 %v1231_v50, %v1227_v48 }
 0x24f   :  { %1531 = vmatprep.mubr.bf16.mxu0 %v1233_v54  ;;  %1572 = vmatprep.mubr.bf16.mxu1 %v1235_v55 }
 0x250   :  { %1532 = vmatmul.mubr.bf16.vlgmr.msra.gmra.mrb[8].mxu0 %v1232_v51  ;;  %1573 = vmatmul.mubr.bf16.vlgmr.msra.gmra.mrb[8].mxu1 %v1234_v52 }
 0x323   :  { %v1810_v56 = vpop.f32.mrb[8].mxu0  ;;  %v1832_v57 = vpop.f32.mrb[8].mxu1 }
 0x324   :  { %v1811_v59 = vpop.f32.mrb[9].mxu0  ;;  %v1833_v60 = vpop.f32.mrb[9].mxu1 }
 0x325   :  { %v1812_v61 = vadd.f32 %v1811_v59, %v1810_v56  ;;  %v1834_v62 = vadd.f32 %v1833_v60, %v1832_v57  ;;  %v1813_v63 = vpop.f32.mrb[10].mxu0  ;;  %v1835_v0 = vpop.f32.mrb[10].mxu1 }
 0x326   :  { %v1814_v1 = vpop.f32.mrb[11].mxu0  ;;  %v1836_v2 = vpop.f32.mrb[11].mxu1 }
 0x327   :  { %v1534_v3 = vadd.f32 %v1812_v61, %v1761_v58  ;;  %v1815_v4 = vadd.f32 %v1814_v1, %v1813_v63  ;;  %v1837_v5 = vadd.f32 %v1836_v2, %v1835_v0 }
 0x329   :  { %v1537_v53 = vadd.f32 %v1815_v4, %v1761_v58  ;;  %v1575_v6 = vadd.f32 %v1834_v62, %v1534_v3 }
 0x32b   :  { %1581 = vmax.xlane.f32.xlu0 %v1575_v6  ;;  %v1578_v7 = vadd.f32 %v1837_v5, %v1537_v53 }
 0x32f   :  { %1583 = vmax.xlane.f32.xlu0 %v1578_v7 }
 0x3b8   :  { %v1582_v8 = vpop.xlane.xlu0 %1581 }
 0x3b9   :  { %v1585_v9 = vsub.f32 %v1575_v6, %v1582_v8 }
 0x3bb   :  { %v1587_v10 = vmul.f32 1.442695, %v1585_v9 }
 0x3bc   :  { %v1584_v11 = vpop.xlane.xlu0 %1583 }
 0x3bd   :  { %v1586_v12 = vsub.f32 %v1578_v7, %v1584_v11  ;;  %2103 = vpow2.f32 %v1587_v10 }
 0x3bf   :  { %v1589_v15 = vmul.f32 1.442695, %v1586_v12 }
 0x3c1   :  { %2105 = vpow2.f32 %v1589_v15 }
 0x3c7   :  { %v2104_v17 = vpop.eup %2103 }
 0x3c8   :  { %1591 = vadd.xlane.f32.xlu1 %v2104_v17 }
 0x3cb   :  { %v2106_v19 = vpop.eup %2105 }
 0x3cc   :  { %1593 = vadd.xlane.f32.xlu1 %v2106_v19 }
 0x455   :  { %v1592_v21 = vpop.xlane.xlu1 %1591 }
 0x456   :  { %2107 = vlog2.f32 %v1592_v21 }
 0x459   :  { %v1594_v22 = vpop.xlane.xlu1 %1593 }
 0x45a   :  { %2109 = vlog2.f32 %v1594_v22 }
 0x460   :  { %v2108_v23 = vpop.eup %2107 }
 0x461   :  { %v1596_v24 = vmul.f32 0.6931472, %v2108_v23 }
 0x463   :  { %v1599_v25 = vsub.f32 %v1585_v9, %v1596_v24 }
 0x464   :  { %v2110_v26 = vpop.eup %2109 }
 0x465   :  { %1601 = vst [vmem:[#allocation10] sm:$0xff] %v1599_v25  ;;  %v1598_v27 = vmul.f32 0.6931472, %v2110_v26 }
 0x467   :  { %v1600_v28 = vsub.f32 %v1586_v12, %v1598_v27 }
 0x469   :  { %1602 = vst [vmem:[#allocation10 + $0x8] sm:$0xff] %v1600_v28 }
 0x46a   :  { %2210 = shalt.err (!%p2207_p8)
}
 0x46b   :  { %s2211_s10 = scalar_lea.hbm %s2404_s7, 256 }
 0x46c   :  { %p2212_p9 = scmp.ne.s32.totalorder %s2404_s7, %s2211_s10  ;;  %p2215_p10 = scmp.lt.u32.totalorder %s2211_s10, %s2404_s7 }
 0x46e   :  { %p2217_p11 = pnand %p2215_p10, %p2212_p9 }
 0x470   :  { %2220 = shalt.err (!%p2217_p11)
}
 0x471   :  { %s2239_s18 = smov 128   ;;  %s2240_s0 = smov 8  }
 0x472   :  { %1614 = dma.vmem_to_hbm [thread:$0]  %s1609_s29, 256, %s2404_s7, [#allocation4], %s2239_s18, %s2239_s18, %s2240_s0  }
 0x473   :  { %2227 = dma.done.wait [#allocation4], 256  }
 0x474   :  { %2228 = vsyncadd [#allocation4], 4294967040 }
 0x475   :  { %1618 = vsyncpa [#allocation3], 1 }
 0x476   :  { %1619 = vsyncpa [#allocation6], 1 }
 0x477   :  { %1620 = vsyncpa [#allocation9], 1 }
 0x478   :  { %1621 = vsyncpa [#allocation4], 1 }

</bundles_post_ra>
